<compile_context>
chip_gen: v7x
topology: tpu7x:2x2x1
jax: 0.10.0
libtpu: 0.0.40
codegen_flags: <defaults>
</compile_context>

<pallas_src>
import functools

import jax
import jax.numpy as jnp
from jax.experimental import pallas as pl
from jax.experimental.pallas import tpu as pltpu


def _wordavg_kernel(ids_ref, tab_ref, w_ref, b_ref, out_ref, *, inv_seq):
    # ids_ref: [TB, S] int32   (token ids for this batch tile)
    # tab_ref: [V, E]  bf16    (VMEM-resident embedding table)
    # w_ref:   [E, Opad] f32   (linear weight, transposed + lane-padded)
    # b_ref:   [1, Opad] f32   (bias, lane-padded)
    # out_ref: [TB, Opad] f32
    ids = ids_ref[...]                                   # [TB, S] int32
    vocab = tab_ref.shape[0]

    # Gather + mean fused as a histogram matmul on the MXU:
    #   pooled[b] = (1/S) * sum_s table[ids[b, s]] = (1/S) * counts[b, :] @ table
    vocab_iota = jax.lax.broadcasted_iota(jnp.int32, (1, 1, vocab), 2)
    onehot = (ids[:, :, None] == vocab_iota).astype(jnp.float32)   # [TB, S, V]
    counts = jnp.sum(onehot, axis=1)                               # [TB, V] exact ints

    pooled = jnp.dot(counts.astype(tab_ref.dtype), tab_ref[...],
                     preferred_element_type=jnp.float32)           # [TB, E] f32
    pooled = pooled * inv_seq                                      # single mul, not a divide per element

    out = jnp.dot(pooled, w_ref[...], preferred_element_type=jnp.float32)
    out_ref[...] = (out + b_ref[...]).astype(out_ref.dtype)        # [TB, Opad]


def word_avg_forward(text, embed_table, linear_w, linear_b, *, batch_tile=None):
    """
    text:        int   [seq_len, batch]
    embed_table: f32   [vocab, embed]
    linear_w:    f32   [output, embed]   (PyTorch layout)
    linear_b:    f32   [output]
    returns:     f32   [batch, output]
    """
    seq_len, batch = text.shape
    vocab, embed = embed_table.shape
    output = linear_w.shape[0]

    # dropout(eval) = identity -> nothing to do.

    # Lane-dense output: pad the output feature dim up to a multiple of 128.
    o_pad = max(128, ((output + 127) // 128) * 128)

    # Token ids presented [batch, seq] (tiny int transpose — the dominant
    # [B,S,E] embedding tensor is never materialized in HBM).
    ids = jnp.transpose(text).astype(jnp.int32)                      # [B, S]

    # bf16 at the HBM boundary for the dominant stream (the table).
    tab_bf16 = embed_table.astype(jnp.bfloat16)                      # [V, E]

    # Linear weight transposed + zero-padded to lane-dense width; bias padded.
    w_t = jnp.zeros((embed, o_pad), jnp.float32).at[:, :output].set(
        jnp.transpose(linear_w))
    b_p = jnp.zeros((1, o_pad), jnp.float32).at[:, :output].set(
        linear_b.reshape(1, output))

    # Batch tile: full batch if small, else a multiple of 8 that stays far
    # below VMEM limits on every generation (incl. v7x's 64 MiB / TC).
    if batch_tile is None:
        batch_tile = batch if batch <= 128 else 128
    tb = batch_tile
    grid = (pl.cdiv(batch, tb),)

    kernel = functools.partial(_wordavg_kernel, inv_seq=float(1.0 / seq_len))

    out_padded = pl.pallas_call(
        kernel,
        out_shape=jax.ShapeDtypeStruct((batch, o_pad), jnp.float32),
        grid=grid,
        in_specs=[
            pl.BlockSpec((tb, seq_len), lambda b: (b, 0)),      # token ids per batch tile
            pl.BlockSpec((vocab, embed), lambda b: (0, 0)),     # embedding table (resident)
            pl.BlockSpec((embed, o_pad), lambda b: (0, 0)),     # linear weight (resident)
            pl.BlockSpec((1, o_pad), lambda b: (0, 0)),         # bias (resident)
        ],
        out_specs=pl.BlockSpec((tb, o_pad), lambda b: (b, 0)),
        compiler_params=pltpu.CompilerParams(
            dimension_semantics=("parallel",)),                 # shard batch tiles across TCs (v7x)
    )(ids, tab_bf16, w_t, b_p)

    return out_padded[:, :output]


if __name__ == "__main__":
    # Small shapes consistent with the module's forward.
    vocab_size = 50
    embed_size = 32
    output_size = 16
    seq_len = 8
    batch = 2
    initrange = 0.1
    # padding_idx: init_weight()'s uniform_ overwrites the zeroed pad row, so
    # no special handling is needed.  dropout: inference mode -> identity.

    key = jax.random.PRNGKey(0)
    k_emb, k_w, k_txt = jax.random.split(key, 3)

    # Deterministic init mirroring init_weight().
    embed_table = jax.random.uniform(
        k_emb, (vocab_size, embed_size), jnp.float32, -initrange, initrange)
    linear_w = jax.random.uniform(
        k_w, (output_size, embed_size), jnp.float32, -initrange, initrange)
    linear_b = jnp.zeros((output_size,), jnp.float32)

    # text: [seq_len, batch] integer token ids.
    text = jax.random.randint(k_txt, (seq_len, batch), 0, vocab_size, jnp.int32)

    out = word_avg_forward(text, embed_table, linear_w, linear_b)
    out = jax.block_until_ready(out)

    # Pure-JAX reference (uses the same bf16-rounded table the kernel streams).
    tab_f32 = embed_table.astype(jnp.bfloat16).astype(jnp.float32)
    ref_emb = jnp.transpose(jnp.take(tab_f32, text, axis=0), (1, 0, 2))   # [B, S, E]
    ref = jnp.mean(ref_emb, axis=1) @ linear_w.T + linear_b

    assert out.shape == (batch, output_size)
    assert jnp.allclose(out, ref, atol=1e-3, rtol=1e-3)

    print("KERNEL_OK")
</pallas_src>

<mosaic_0001>
module attributes {stable_mosaic.version = 11 : i64} {
  func.func @_wordavg_kernel(%arg0: i32, %arg1: memref<2x8xi32, #tpu.memory_space<vmem>>, %arg2: memref<50x32xbf16, #tpu.memory_space<vmem>>, %arg3: memref<32x128xf32, #tpu.memory_space<vmem>>, %arg4: memref<1x128xf32, #tpu.memory_space<vmem>>, %arg5: memref<2x128xf32, #tpu.memory_space<vmem>>) attributes {dimension_semantics = [#tpu.dimension_semantics<parallel>], iteration_bounds = array<i64: 1>, scalar_prefetch = 0 : i64, scratch_operands = 0 : i64, tpu.core_type = #tpu.core_type<tc>, window_params = [{transform_indices = @transform_0, window_bounds = array<i64: 2, 8>}, {pipeline_mode = #tpu.pipeline_mode<synchronous>, transform_indices = @transform_1, window_bounds = array<i64: 50, 32>}, {pipeline_mode = #tpu.pipeline_mode<synchronous>, transform_indices = @transform_2, window_bounds = array<i64: 32, 128>}, {pipeline_mode = #tpu.pipeline_mode<synchronous>, transform_indices = @transform_3, window_bounds = array<i64: 1, 128>}, {transform_indices = @transform_4, window_bounds = array<i64: 2, 128>}]} {
    %c0 = arith.constant 0 : index
    %c0_0 = arith.constant 0 : index
    %0 = vector.load %arg1[%c0, %c0_0] : memref<2x8xi32, #tpu.memory_space<vmem>>, vector<2x8xi32>
    %1 = tpu.iota {dimensions = array<i32: 2>} : vector<1x1x50xi32>
    %2 = vector.shape_cast %0 : vector<2x8xi32> to vector<2x8x1xi32>
    %3 = vector.broadcast %2 : vector<2x8x1xi32> to vector<2x8x50xi32>
    %4 = vector.broadcast %1 : vector<1x1x50xi32> to vector<2x8x50xi32>
    %5 = arith.cmpi eq, %3, %4 : vector<2x8x50xi32>
    %6 = arith.extui %5 : vector<2x8x50xi1> to vector<2x8x50xi32>
    %7 = arith.sitofp %6 : vector<2x8x50xi32> to vector<2x8x50xf32>
    %cst = arith.constant dense<0.000000e+00> : vector<2x50xf32>
    %8 = vector.multi_reduction <add>, %7, %cst [1] : vector<2x8x50xf32> to vector<2x50xf32>
    %9 = arith.truncf %8 : vector<2x50xf32> to vector<2x50xbf16>
    %c0_1 = arith.constant 0 : index
    %c0_2 = arith.constant 0 : index
    %10 = vector.load %arg2[%c0_1, %c0_2] : memref<50x32xbf16, #tpu.memory_space<vmem>>, vector<50x32xbf16>
    %cst_3 = arith.constant dense<0.000000e+00> : vector<2x32xf32>
    %11 = tpu.matmul %9, %10, %cst_3 {dimension_numbers = #tpu.dot_dimension_numbers<[1], [0], [0], [1], [0, 0, 1, 1], [], []>} : vector<2x50xbf16>, vector<50x32xbf16>, vector<2x32xf32> -> vector<2x32xf32>
    %cst_4 = arith.constant 1.250000e-01 : f32
    %12 = vector.broadcast %cst_4 : f32 to vector<2x32xf32>
    %13 = arith.mulf %11, %12 : vector<2x32xf32>
    %c0_5 = arith.constant 0 : index
    %c0_6 = arith.constant 0 : index
    %14 = vector.load %arg3[%c0_5, %c0_6] : memref<32x128xf32, #tpu.memory_space<vmem>>, vector<32x128xf32>
    %cst_7 = arith.constant dense<0.000000e+00> : vector<2x128xf32>
    %15 = tpu.matmul %13, %14, %cst_7 {dimension_numbers = #tpu.dot_dimension_numbers<[1], [0], [0], [1], [0, 0, 1, 1], [], []>} : vector<2x32xf32>, vector<32x128xf32>, vector<2x128xf32> -> vector<2x128xf32>
    %c0_8 = arith.constant 0 : index
    %c0_9 = arith.constant 0 : index
    %16 = vector.load %arg4[%c0_8, %c0_9] : memref<1x128xf32, #tpu.memory_space<vmem>>, vector<1x128xf32>
    %17 = vector.broadcast %16 : vector<1x128xf32> to vector<2x128xf32>
    %18 = arith.addf %15, %17 : vector<2x128xf32>
    %c0_10 = arith.constant 0 : index
    %c0_11 = arith.constant 0 : index
    %19 = vector.load %arg5[%c0_10, %c0_11] : memref<2x128xf32, #tpu.memory_space<vmem>>, vector<2x128xf32>
    tpu.vector_store %arg5[%c0_10, %c0_11], %18 {strides = array<i32>} : memref<2x128xf32, #tpu.memory_space<vmem>>, vector<2x128xf32>,
    return
  }
  func.func @transform_0(%arg0: i32) -> (i32, i32) {
    %c0_i32 = arith.constant 0 : i32
    %c0_i32_0 = arith.constant 0 : i32
    return %arg0, %c0_i32 : i32, i32
  }
  func.func @transform_1(%arg0: i32) -> (i32, i32) {
    %c0_i32 = arith.constant 0 : i32
    %c0_i32_0 = arith.constant 0 : i32
    %c0_i32_1 = arith.constant 0 : i32
    return %c0_i32, %c0_i32_0 : i32, i32
  }
  func.func @transform_2(%arg0: i32) -> (i32, i32) {
    %c0_i32 = arith.constant 0 : i32
    %c0_i32_0 = arith.constant 0 : i32
    %c0_i32_1 = arith.constant 0 : i32
    return %c0_i32, %c0_i32_0 : i32, i32
  }
  func.func @transform_3(%arg0: i32) -> (i32, i32) {
    %c0_i32 = arith.constant 0 : i32
    %c0_i32_0 = arith.constant 0 : i32
    %c0_i32_1 = arith.constant 0 : i32
    return %c0_i32, %c0_i32_0 : i32, i32
  }
  func.func @transform_4(%arg0: i32) -> (i32, i32) {
    %c0_i32 = arith.constant 0 : i32
    %c0_i32_0 = arith.constant 0 : i32
    return %arg0, %c0_i32 : i32, i32
  }
}

</mosaic_0001>

<bundles_post_ra>
// kernel: tpu_custom_call.1
= control target key start
LH: loop header
LB: loop body
LE: loop exit
PB: predicated region body
PF: predicated region fallthrough
CT: control target
= control target key end

     0   :  { %v20_v0 = vlaneseq  ;;  %v322_v1 = vmov 0.0   ;;  %s396_s0 = inlined_call_operand.vmem [shape: s32[2,8], index: 0, kind: input, shape index: {}]   ;;  %s397_s1 = inlined_call_operand.vmem [shape: bf16[50,32], index: 1, kind: input, shape index: {}]   ;;  %s398_s2 = inlined_call_operand.vmem [shape: f32[32,128], index: 2, kind: input, shape index: {}]   ;;  %s399_s3 = inlined_call_operand.vmem [shape: f32[1,128], index: 3, kind: input, shape index: {}]   ;;  %s400_s4 = inlined_call_operand.hbm [shape: f32[2,128], index: 4, kind: output, shape index: {}]  }
   0x1   :  { %261 = vmatprep.subr.bf16.mxu0 %v322_v1  ;;  %v19_v3 = vld [vmem:[%s396_s0] sm:$0x3] }
   0x2   :  { %v23_v2 = vshrl.u32 %v20_v0, 7 }
   0x3   :  { %9 = vsyncpa [#allocation3], 0  ;;  %v294_v6 = vld [vmem:[%s397_s1] sm:$0xff]   ;;  %v295_v9 = vld [vmem:[%s397_s1 + $0x8] sm:$0xff]   ;;  %vm97_vm0 = vcmask 1040384   ;;  %vm323_vm1 = vmmov 0  }
   0x4   :  { %v24_v4 = vsub.s32 0, %v23_v2  ;;  %v31_v5 = vsub.s32 1, %v23_v2  ;;  %262 = vmatpush3.bf16.msra.mxu0 %v294_v6  ;;  %v296_v10 = vld [vmem:[%s397_s1 + $0x10] sm:$0xff]   ;;  %v297_v11 = vld [vmem:[%s397_s1 + $0x18] ss:$0 sps:$4 sm:$0x11]   ;;  %269 = vmatprep.mubr.msk.bf16.mxu0 %vm323_vm1, %v322_v1 }
   0x5   :  { %263 = vmatprep.subr.bf16.mxu0 %v322_v1  ;;  %v99_v12 = vsel %vm97_vm0, %v297_v11, 0  ;;  %281 = vmatprep.mubr.msk.f32.mxu1 %vm323_vm1, %v322_v1  ;;  %v142_v13 = vld [vmem:[%s398_s2] sm:$0xff]  ;;  %v143_v14 = vld [vmem:[%s398_s2 + $0x8] sm:$0xff]  ;;  %v324_v15 = vmov 0.0|0.0   ;;  %v21_v17 = vand.u32 127, %v20_v0  ;;  %vm42_vm2 = vcmask 408576  }
   0x6   :  { %v25_v7 = vrot.slane %v19_v3, %v24_v4  ;;  %v32_v8 = vrot.slane %v19_v3, %v31_v5  ;;  %284 = vmatprep.subr.bf16.mxu1 %v324_v15  ;;  %v285_v16 = vpack.c.bf16 %v143_v14, %v142_v13  ;;  %vm70_vm5 = vcmask 1041409   ;;  %v144_v42 = vld [vmem:[%s398_s2 + $0x10] sm:$0xff]  ;;  %v145_v43 = vld [vmem:[%s398_s2 + $0x18] sm:$0xff]  ;;  %v249_v50 = vld [vmem:[%s399_s3] ss:$0 sm:$0xff]  ;;  %s325_s7 = smov [#allocation2]  }
   0x7   :  { %v288_v44 = vpack.c.bf16 %v145_v43, %v144_v42  ;;  %vm153_vm6 = vcmask 261120   ;;  %s234_s8 = sshll.u32 %s325_s7, 4  ;;  %s235_s8 = int_to_ptr.vmem [resolvable:$true] %s234_s8 }
   0x8   :  { %27 = vbcast.lane.b32.xlu0 %v25_v7, 256  ;;  %264 = vmatpush3.bf16.msra.mxu0 %v295_v9  ;;  %s298_s2 = scalar_lea.vmem %s235_s8, 32  ;;  %p303_p1 = scmp.lt.s32.totalorder %s235_s8, %s235_s8 }
   0x9   :  { %265 = vmatprep.subr.bf16.mxu0 %v322_v1  ;;  %286 = vmatpush3.bf16.msra.mxu1 %v285_v16  ;;  %p299_p0 = scmp.ne.s32.totalorder %s235_s8, %s298_s2  ;;  %p304_p2 = scmp.lt.s32.totalorder %s298_s2, %s298_s2 }
   0xa   :  { %287 = vmatprep.subr.bf16.mxu1 %v324_v15 }
   0xb   :  { %p305_p3 = por %p304_p2, %p303_p1 }
   0xc   :  { %34 = vbcast.lane.b32.xlu0 %v32_v8, 256  ;;  %266 = vmatpush3.bf16.msra.mxu0 %v296_v10 }
   0xd   :  { %267 = vmatprep.subr.bf16.mxu0 %v322_v1  ;;  %289 = vmatpush3.bf16.msra.mxu1 %v288_v44  ;;  %p306_p4 = pnand %p305_p3, %p299_p0 }
  0x10   :  { %268 = vmatpush3.bf16.msra.mxu0 %v99_v12 }
  0x7a   :  { %v28_v18 = vpop.permute.xlu0 %27 }
  0x7b   :  { %vm36_vm3 = vcmp.eq.s32.totalorder %v28_v18, %v21_v17 }
  0x7c   :  { %v242_v19 = vsel %vm36_vm3, 1.0, %v322_v1 }
  0x7d   :  { %v43_v20 = vsel %vm42_vm2, %v242_v19, 0.0 }
  0x7e   :  { %v44_v21 = vrot.slane %v43_v20, 4  ;;  %v35_v22 = vpop.permute.xlu0 %34 }
  0x7f   :  { %vm37_vm4 = vcmp.eq.s32.totalorder %v35_v22, %v21_v17 }
  0x80   :  { %v45_v23 = vadd.f32 %v44_v21, %v43_v20  ;;  %v243_v24 = vsel %vm37_vm4, 1.0, %v322_v1 }
  0x81   :  { %v50_v25 = vsel %vm42_vm2, %v243_v24, 0.0 }
  0x82   :  { %v46_v26 = vrot.slane %v45_v23, 2  ;;  %v51_v27 = vrot.slane %v50_v25, 4 }
  0x84   :  { %v47_v28 = vadd.f32 %v46_v26, %v45_v23  ;;  %v52_v29 = vadd.f32 %v51_v27, %v50_v25 }
  0x86   :  { %v48_v30 = vrot.slane %v47_v28, 1  ;;  %v53_v31 = vrot.slane %v52_v29, 2 }
  0x88   :  { %v49_v32 = vadd.f32 %v48_v30, %v47_v28  ;;  %v54_v33 = vadd.f32 %v53_v31, %v52_v29 }
  0x8a   :  { %v55_v34 = vrot.slane %v54_v33, 1  ;;  %v57_v35 = vpack.c.bf16 %v49_v32, %v49_v32 }
  0x8c   :  { %v56_v36 = vadd.f32 %v55_v34, %v54_v33  ;;  %v68_v38 = vunpack.c.l.b16 %v57_v35 }
  0x8e   :  { %v58_v37 = vpack.c.bf16 %v56_v36, %v56_v36 }
  0x90   :  { %v69_v39 = vunpack.c.l.b16 %v58_v37 }
  0x92   :  { %v71_v40 = vsel %vm70_vm5, %v69_v39, %v68_v38 }
  0x93   :  { %v72_v41 = vpack.c.b16 %v71_v40, %v71_v40 }
  0x95   :  { %270 = vmatmul.mubr.msk.bf16.vlgmr.msra.gmra.mrb[0].mxu0 %vm42_vm2, %v72_v41 }
 0x168   :  { %v135_v45 = vpop.f32.mrb[0].mxu0 }
 0x169   :  { %v141_v46 = vmul.f32 0.125, %v135_v45  ;;  %v271_v47 = vpop.f32.mrb[1].mxu0 }
 0x16a   :  { %v138_v48 = vpop.f32.mrb[2].mxu0 }
 0x16b   :  { %v272_v49 = vpop.f32.mrb[3].mxu0  ;;  %282 = vmatmul.mubr.msk.f32.vlgmr.msra.gmra.mrb[0].mxu1 %vm153_vm6, %v141_v46 }
 0x23e   :  { %v223_v51 = vpop.f32.mrb[0].mxu1 }
 0x23f   :  { %v224_v52 = vadd.f32 %v249_v50, %v223_v51  ;;  %v283_v53 = vpop.f32.mrb[1].mxu1 }
 0x241   :  { %227 = vst [vmem:[#allocation2] sm:$0x3] %v224_v52 }
 0x242   :  { %309 = shalt.err (!%p306_p4)
}
 0x243   :  { %s310_s11 = scalar_lea.hbm %s400_s4, 32 }
 0x244   :  { %p311_p5 = scmp.ne.s32.totalorder %s400_s4, %s310_s11  ;;  %p314_p6 = scmp.lt.u32.totalorder %s310_s11, %s400_s4 }
 0x246   :  { %p316_p7 = pnand %p314_p6, %p311_p5 }
 0x248   :  { %319 = shalt.err (!%p316_p7)
}
 0x249   :  { %237 = dma.vmem_to_hbm [thread:$0]  %s235_s8, 32, %s400_s4, [#allocation3]  }
 0x24a   :  { %320 = dma.done.wait [#allocation3], 32  }
 0x24b   :  { %321 = vsyncadd [#allocation3], 4294967264 }
 0x24c   :  { %241 = vsyncpa [#allocation3], 1 }

</bundles_post_ra>
